<compile_context>
chip_gen: v7x
topology: tpu7x:2x2x1
jax: 0.10.0
libtpu: 0.0.40
codegen_flags: <defaults>
</compile_context>

<pallas_src>
import functools
import math

import jax
import jax.numpy as jnp
import numpy as np
from jax.experimental import pallas as pl
from jax.experimental.pallas import tpu as pltpu

EPS = 1e-5          # PyTorch BatchNorm1d default eps
LANE = 128          # lane width / padding target


def _round_up(n, m):
    return ((n + m - 1) // m) * m


def _vmem_limit_bytes(est):
    """Generation-aware scoped-VMEM request (derived from get_tpu_info)."""
    try:
        cap = int(pltpu.get_tpu_info().vmem_capacity_bytes)
    except Exception:
        cap = 64 << 20          # conservative fallback: v7x-class 64 MiB per TC
    # Headroom for compiler scratch / double-buffered weight copies:
    #   128 MiB parts (v5e/v6e) -> ~96 MiB ceiling, 64 MiB parts (v7x) -> ~42 MiB.
    ceiling = max((cap * 2) // 3, cap - (32 << 20))
    # TODO(synk): when est > ceiling, switch to the row-tiled path instead of
    # clamping (needs the BN-stats restructure above).
    return int(min(ceiling, max(est, 8 << 20)))


# ---------------------------------------------------------------------------
# Kernel 1: fused ResMLP forward + min-recentering epilogue
# ---------------------------------------------------------------------------
def _resmlp_kernel(nblocks, out_size, x_ref, *refs):
    """refs = (W0, [W1a, W1b] * nblocks, Wout, o_ref); weights bf16 (in, out),
    zero-padded to lane-dense shapes (padding is numerically inert through
    matmul / BN / ReLU / residual add)."""
    o_ref = refs[-1]
    w = refs[:-1]
    rows = x_ref.shape[0]
    inv_n = 1.0 / rows

    def bn_relu(h):
        # One-pass batch stats (biased variance, clamped for cancellation).
        s1 = jnp.sum(h, axis=0, keepdims=True)
        s2 = jnp.sum(h * h, axis=0, keepdims=True)
        mean = s1 * inv_n
        var = jnp.maximum(s2 * inv_n - mean * mean, 0.0)
        return jnp.maximum((h - mean) * jax.lax.rsqrt(var + EPS), 0.0)

    x = x_ref[...].astype(jnp.bfloat16)

    # In_layer + relu_1 (zero bias dropped; BN gamma/beta folded).
    h = jnp.maximum(jnp.dot(x, w[0][...], preferred_element_type=jnp.float32), 0.0)

    # Residual blocks.
    idx = 1
    for _ in range(nblocks):
        W1, W2 = w[idx][...], w[idx + 1][...]
        idx += 2
        t = bn_relu(h)
        t = jnp.dot(t.astype(jnp.bfloat16), W1, preferred_element_type=jnp.float32)
        t = bn_relu(t)
        t = jnp.dot(t.astype(jnp.bfloat16), W2, preferred_element_type=jnp.float32)
        h = h + t

    # Final_BN + relu_n + Out_layer.
    h = bn_relu(h)
    out = jnp.dot(h.astype(jnp.bfloat16), w[idx][...],
                  preferred_element_type=jnp.float32)

    # Fused epilogue: per-row min over the REAL out_size columns only.
    # Hoisted (1, out_pad) lane penalty instead of a full (rows, out_pad)
    # iota + select (review item).
    col = jax.lax.broadcasted_iota(jnp.int32, (1, out.shape[-1]), 1)
    pad_penalty = jnp.where(col < out_size, 0.0, 1e30).astype(jnp.float32)
    row_min = jnp.min(out + pad_penalty, axis=-1, keepdims=True)
    # Unpadded store: only the semantically live columns hit HBM.
    o_ref[...] = out[:, :out_size] - row_min


def resmlp_forward(x2d, params, nblocks, out_size):
    rows = x2d.shape[0]
    hid_pad = params[0].shape[-1]
    out_pad = params[-1].shape[-1]

    w_bytes = sum(int(p.size) * p.dtype.itemsize for p in params)
    act_bytes = 4 * rows * max(hid_pad, out_pad)
    est = 12 * act_bytes + 2 * w_bytes + 2 * 4 * rows * x2d.shape[-1] + (2 << 20)

    kernel = functools.partial(_resmlp_kernel, nblocks, out_size)
    return pl.pallas_call(
        kernel,
        out_shape=jax.ShapeDtypeStruct((rows, out_size), jnp.float32),
        in_specs=[pl.BlockSpec(memory_space=pltpu.MemorySpace.VMEM)] * (1 + len(params)),
        out_specs=pl.BlockSpec(memory_space=pltpu.MemorySpace.VMEM),
        compiler_params=pltpu.CompilerParams(vmem_limit_bytes=_vmem_limit_bytes(est)),
    )(x2d, *params)


# ---------------------------------------------------------------------------
# Kernel 2: write the pairwise tensor exactly once (Pallas scatter)
# ---------------------------------------------------------------------------
def _assemble_kernel(tbl_ref, pf_ref, pt_ref, o_ref):
    del tbl_ref                       # consumed by the index_maps only
    i = pl.program_id(1)
    j = pl.program_id(2)
    # Exact arithmetic blend (factors are 0.0 / 1.0 and blocks are finite):
    #   i < j : forward block, i > j : transposed block, i == j : zeros.
    up = (i < j).astype(jnp.float32)
    off_diag = (i != j).astype(jnp.float32)
    o_ref[...] = off_diag * (up * pf_ref[...] + (1.0 - up) * pt_ref[...])


def assemble_pairwise(pred_blk, pred_blk_t, pair_tbl, bs, nb_var, nb_val, npairs):
    """out[b,i,j] = pred[(i,j)], out[b,j,i] = pred[(i,j)].T, diag = 0."""
    def blk_map(b, i, j, tbl):
        return (b * npairs + tbl[i * nb_var + j], 0, 0)

    def out_map(b, i, j, tbl):
        return (b, i, j, 0, 0)

    return pl.pallas_call(
        _assemble_kernel,
        out_shape=jax.ShapeDtypeStruct((bs, nb_var, nb_var, nb_val, nb_val),
                                       jnp.float32),
        grid_spec=pltpu.PrefetchScalarGridSpec(
            num_scalar_prefetch=1,
            grid=(bs, nb_var, nb_var),
            in_specs=[pl.BlockSpec((None, nb_val, nb_val), blk_map),
                      pl.BlockSpec((None, nb_val, nb_val), blk_map)],
            out_specs=pl.BlockSpec((None, None, None, nb_val, nb_val), out_map),
        ),
        compiler_params=pltpu.CompilerParams(
            dimension_semantics=("parallel", "arbitrary", "arbitrary")),
    )(pair_tbl, pred_blk, pred_blk_t)


# ---------------------------------------------------------------------------
# Parameter init (weights_init: kaiming_uniform fan_in/relu, zero bias;
# BN gamma=1 / beta=0 folded into the kernel).  Weights stored (in, out),
# zero-padded to lane-dense shapes, bf16.
# ---------------------------------------------------------------------------
def _kaiming_uniform_padded(key, fan_in, fan_out, pad_in, pad_out):
    bound = math.sqrt(6.0 / fan_in)   # gain(relu)=sqrt(2) -> bound = sqrt(6/fan_in)
    w = jax.random.uniform(key, (fan_in, fan_out), jnp.float32, -bound, bound)
    w = jnp.pad(w, ((0, pad_in - fan_in), (0, pad_out - fan_out)))
    return w.astype(jnp.bfloat16)


def init_resmlp_params(key, input_size, hidden_size, output_size, nblocks):
    hid_pad = _round_up(hidden_size, LANE)
    out_pad = _round_up(output_size, LANE)
    keys = iter(jax.random.split(key, 2 + 2 * nblocks))
    # TODO(synk): pad fan_in of the first layer (and the gathered features) to a
    # 16-multiple for bf16 sublane alignment; negligible at nb_feat=8.
    params = [_kaiming_uniform_padded(next(keys), input_size, hidden_size,
                                      input_size, hid_pad)]
    for _ in range(nblocks):
        params.append(_kaiming_uniform_padded(next(keys), hidden_size, hidden_size,
                                              hid_pad, hid_pad))
        params.append(_kaiming_uniform_padded(next(keys), hidden_size, hidden_size,
                                              hid_pad, hid_pad))
    params.append(_kaiming_uniform_padded(next(keys), hidden_size, output_size,
                                          hid_pad, out_pad))
    return params


# ---------------------------------------------------------------------------
# Net.forward equivalent
# ---------------------------------------------------------------------------
def _pair_indices(nb_var):
    iu, ju = np.triu_indices(nb_var, k=1)        # same row-major order as torch
    npairs = int(iu.shape[0])
    tbl = np.zeros((nb_var, nb_var), np.int32)
    tbl[iu, ju] = np.arange(npairs, dtype=np.int32)
    tbl[ju, iu] = np.arange(npairs, dtype=np.int32)   # diagonal stays 0 (dummy)
    return iu, ju, npairs, tbl.reshape(-1)


def net_forward(x, mlp_params, mlpu_params, nb_var, nb_val, nb_feat,
                nblocks=2, unary=False):
    bs = x.shape[0]
    iu, ju, npairs, pair_tbl = _pair_indices(nb_var)

    # Pairwise head.
    # TODO(synk): fuse this gather into the MLP kernel (Element row gather with
    # scalar-prefetched indices) once the MLP is row-tiled.
    rr = x[:, iu, ju].reshape(-1, nb_feat)                 # (bs*npairs, nb_feat)
    pred = resmlp_forward(rr, mlp_params, nblocks, nb_val * nb_val)
    pred_blk = pred.reshape(bs * npairs, nb_val, nb_val)   # contiguous reshape
    # TODO(synk): fold this small transposed copy into the ResMLP epilogue
    # (lane-permutation matmul) to avoid one HBM round trip of pred.
    pred_blk_t = jnp.swapaxes(pred_blk, 1, 2)

    out = assemble_pairwise(pred_blk, pred_blk_t, jnp.asarray(pair_tbl),
                            bs, nb_var, nb_val, npairs)

    # Unary head.
    if unary:
        d = np.arange(nb_var)
        un = x[:, d, d].reshape(-1, nb_feat)               # (bs*nb_var, nb_feat)
        predu = resmlp_forward(un, mlpu_params, 1, nb_val).reshape(bs, nb_var, nb_val)
    else:
        predu = jnp.zeros((bs, nb_var, nb_val), jnp.float32)
    return out, predu


# ---------------------------------------------------------------------------
# Pure-JAX reference (f32 everywhere) for a sanity check in __main__
# ---------------------------------------------------------------------------
def _resmlp_ref(x2d, params, nblocks):
    def bn(h):
        mean = h.mean(axis=0, keepdims=True)
        var = ((h - mean) ** 2).mean(axis=0, keepdims=True)
        return (h - mean) / jnp.sqrt(var + EPS)

    w = [p.astype(jnp.float32) for p in params]
    h = jnp.maximum(x2d @ w[0], 0.0)
    idx = 1
    for _ in range(nblocks):
        t = jnp.maximum(bn(h), 0.0) @ w[idx]
        t = jnp.maximum(bn(t), 0.0) @ w[idx + 1]
        idx += 2
        h = h + t
    return jnp.maximum(bn(h), 0.0) @ w[idx]


def net_forward_ref(x, mlp_params, mlpu_params, nb_var, nb_val, nb_feat,
                    nblocks=2, unary=False):
    bs = x.shape[0]
    iu, ju = np.triu_indices(nb_var, k=1)
    npairs = int(iu.shape[0])
    rr = x[:, iu, ju].reshape(-1, nb_feat)
    pred = _resmlp_ref(rr, mlp_params, nblocks)[:, : nb_val * nb_val]
    pred = pred.reshape(bs, npairs, nb_val, nb_val)
    out = jnp.zeros((bs, nb_var, nb_var, nb_val, nb_val), jnp.float32)
    out = out.at[:, iu, ju].set(pred)
    out = out.at[:, ju, iu].set(jnp.swapaxes(pred, 2, 3))
    out = out - out.min(axis=-1).min(axis=-1)[..., None, None]
    if unary:
        d = np.arange(nb_var)
        un = x[:, d, d].reshape(-1, nb_feat)
        predu = _resmlp_ref(un, mlpu_params, 1)[:, :nb_val].reshape(bs, nb_var, nb_val)
        predu = predu - predu.min(axis=-1, keepdims=True)
    else:
        predu = jnp.zeros((bs, nb_var, nb_val), jnp.float32)
    return out, predu


if __name__ == "__main__":
    bs, nb_var, nb_val, nb_feat, hidden = 2, 4, 3, 8, 32
    key = jax.random.PRNGKey(0)
    kx, k_mlp, k_mlpu = jax.random.split(key, 3)

    x = jax.random.normal(kx, (bs, nb_var, nb_var, nb_feat), jnp.float32)
    mlp_params = init_resmlp_params(k_mlp, nb_feat, hidden, nb_val ** 2, nblocks=2)
    mlpu_params = init_resmlp_params(k_mlpu, nb_feat, hidden, nb_val, nblocks=1)

    out, predu = net_forward(x, mlp_params, mlpu_params, nb_var, nb_val, nb_feat,
                             nblocks=2, unary=True)
    jax.block_until_ready((out, predu))

    assert out.shape == (bs, nb_var, nb_var, nb_val, nb_val)
    assert predu.shape == (bs, nb_var, nb_val)
    assert bool(jnp.all(jnp.isfinite(out))) and bool(jnp.all(jnp.isfinite(predu)))

    # Structural invariants of the reference forward (exact by construction).
    d = np.arange(nb_var)
    assert bool(jnp.all(out[:, d, d] == 0.0))                                  # zero diag blocks
    assert bool(jnp.all(out == jnp.swapaxes(jnp.swapaxes(out, 1, 2), 3, 4)))   # block symmetry

    # Pure-JAX f32 reference; kernel uses bf16 MXU inputs -> loose tolerance.
    out_ref, predu_ref = net_forward_ref(x, mlp_params, mlpu_params, nb_var,
                                         nb_val, nb_feat, nblocks=2, unary=True)
    assert float(jnp.max(jnp.abs(out - out_ref))) < 0.25
    assert float(jnp.max(jnp.abs(predu - predu_ref))) < 0.25

    print("KERNEL_OK")
</pallas_src>

<mosaic_0001>
module attributes {stable_mosaic.version = 11 : i64} {
  func.func @_resmlp_kernel(%arg0: memref<12x8xf32, #tpu.memory_space<vmem>>, %arg1: memref<8x128xbf16, #tpu.memory_space<vmem>>, %arg2: memref<128x128xbf16, #tpu.memory_space<vmem>>, %arg3: memref<128x128xbf16, #tpu.memory_space<vmem>>, %arg4: memref<128x128xbf16, #tpu.memory_space<vmem>>, %arg5: memref<128x128xbf16, #tpu.memory_space<vmem>>, %arg6: memref<128x128xbf16, #tpu.memory_space<vmem>>, %arg7: memref<12x9xf32, #tpu.memory_space<vmem>>) attributes {dimension_semantics = [], scalar_prefetch = 0 : i64, scratch_operands = 0 : i64, tpu.core_type = #tpu.core_type<tc>} {
    %c0 = arith.constant 0 : index
    %c0_0 = arith.constant 0 : index
    %0 = vector.load %arg0[%c0, %c0_0] : memref<12x8xf32, #tpu.memory_space<vmem>>, vector<12x8xf32>
    %1 = arith.truncf %0 : vector<12x8xf32> to vector<12x8xbf16>
    %c0_1 = arith.constant 0 : index
    %c0_2 = arith.constant 0 : index
    %2 = vector.load %arg1[%c0_1, %c0_2] : memref<8x128xbf16, #tpu.memory_space<vmem>>, vector<8x128xbf16>
    %cst = arith.constant dense<0.000000e+00> : vector<12x128xf32>
    %3 = tpu.matmul %1, %2, %cst {dimension_numbers = #tpu.dot_dimension_numbers<[1], [0], [0], [1], [0, 0, 1, 1], [], []>} : vector<12x8xbf16>, vector<8x128xbf16>, vector<12x128xf32> -> vector<12x128xf32>
    %cst_3 = arith.constant 0.000000e+00 : f32
    %4 = vector.broadcast %cst_3 : f32 to vector<12x128xf32>
    %5 = arith.maximumf %3, %4 : vector<12x128xf32>
    %c0_4 = arith.constant 0 : index
    %c0_5 = arith.constant 0 : index
    %6 = vector.load %arg2[%c0_4, %c0_5] : memref<128x128xbf16, #tpu.memory_space<vmem>>, vector<128x128xbf16>
    %c0_6 = arith.constant 0 : index
    %c0_7 = arith.constant 0 : index
    %7 = vector.load %arg3[%c0_6, %c0_7] : memref<128x128xbf16, #tpu.memory_space<vmem>>, vector<128x128xbf16>
    %cst_8 = arith.constant dense<0.000000e+00> : vector<128xf32>
    %8 = vector.multi_reduction <add>, %5, %cst_8 [0] : vector<12x128xf32> to vector<128xf32>
    %9 = vector.shape_cast %8 : vector<128xf32> to vector<1x128xf32>
    %10 = arith.mulf %5, %5 : vector<12x128xf32>
    %cst_9 = arith.constant dense<0.000000e+00> : vector<128xf32>
    %11 = vector.multi_reduction <add>, %10, %cst_9 [0] : vector<12x128xf32> to vector<128xf32>
    %12 = vector.shape_cast %11 : vector<128xf32> to vector<1x128xf32>
    %cst_10 = arith.constant 0.0833333358 : f32
    %13 = vector.broadcast %cst_10 : f32 to vector<1x128xf32>
    %14 = arith.mulf %9, %13 : vector<1x128xf32>
    %cst_11 = arith.constant 0.0833333358 : f32
    %15 = vector.broadcast %cst_11 : f32 to vector<1x128xf32>
    %16 = arith.mulf %12, %15 : vector<1x128xf32>
    %17 = arith.mulf %14, %14 : vector<1x128xf32>
    %18 = arith.subf %16, %17 : vector<1x128xf32>
    %cst_12 = arith.constant 0.000000e+00 : f32
    %19 = vector.broadcast %cst_12 : f32 to vector<1x128xf32>
    %20 = arith.maximumf %18, %19 : vector<1x128xf32>
    %21 = vector.broadcast %14 : vector<1x128xf32> to vector<12x128xf32>
    %22 = arith.subf %5, %21 : vector<12x128xf32>
    %cst_13 = arith.constant 9.99999974E-6 : f32
    %23 = vector.broadcast %cst_13 : f32 to vector<1x128xf32>
    %24 = arith.addf %20, %23 : vector<1x128xf32>
    %25 = math.rsqrt %24 : vector<1x128xf32>
    %26 = vector.broadcast %25 : vector<1x128xf32> to vector<12x128xf32>
    %27 = arith.mulf %22, %26 : vector<12x128xf32>
    %cst_14 = arith.constant 0.000000e+00 : f32
    %28 = vector.broadcast %cst_14 : f32 to vector<12x128xf32>
    %29 = arith.maximumf %27, %28 : vector<12x128xf32>
    %30 = arith.truncf %29 : vector<12x128xf32> to vector<12x128xbf16>
    %cst_15 = arith.constant dense<0.000000e+00> : vector<12x128xf32>
    %31 = tpu.matmul %30, %6, %cst_15 {dimension_numbers = #tpu.dot_dimension_numbers<[1], [0], [0], [1], [0, 0, 1, 1], [], []>} : vector<12x128xbf16>, vector<128x128xbf16>, vector<12x128xf32> -> vector<12x128xf32>
    %cst_16 = arith.constant dense<0.000000e+00> : vector<128xf32>
    %32 = vector.multi_reduction <add>, %31, %cst_16 [0] : vector<12x128xf32> to vector<128xf32>
    %33 = vector.shape_cast %32 : vector<128xf32> to vector<1x128xf32>
    %34 = arith.mulf %31, %31 : vector<12x128xf32>
    %cst_17 = arith.constant dense<0.000000e+00> : vector<128xf32>
    %35 = vector.multi_reduction <add>, %34, %cst_17 [0] : vector<12x128xf32> to vector<128xf32>
    %36 = vector.shape_cast %35 : vector<128xf32> to vector<1x128xf32>
    %cst_18 = arith.constant 0.0833333358 : f32
    %37 = vector.broadcast %cst_18 : f32 to vector<1x128xf32>
    %38 = arith.mulf %33, %37 : vector<1x128xf32>
    %cst_19 = arith.constant 0.0833333358 : f32
    %39 = vector.broadcast %cst_19 : f32 to vector<1x128xf32>
    %40 = arith.mulf %36, %39 : vector<1x128xf32>
    %41 = arith.mulf %38, %38 : vector<1x128xf32>
    %42 = arith.subf %40, %41 : vector<1x128xf32>
    %cst_20 = arith.constant 0.000000e+00 : f32
    %43 = vector.broadcast %cst_20 : f32 to vector<1x128xf32>
    %44 = arith.maximumf %42, %43 : vector<1x128xf32>
    %45 = vector.broadcast %38 : vector<1x128xf32> to vector<12x128xf32>
    %46 = arith.subf %31, %45 : vector<12x128xf32>
    %cst_21 = arith.constant 9.99999974E-6 : f32
    %47 = vector.broadcast %cst_21 : f32 to vector<1x128xf32>
    %48 = arith.addf %44, %47 : vector<1x128xf32>
    %49 = math.rsqrt %48 : vector<1x128xf32>
    %50 = vector.broadcast %49 : vector<1x128xf32> to vector<12x128xf32>
    %51 = arith.mulf %46, %50 : vector<12x128xf32>
    %cst_22 = arith.constant 0.000000e+00 : f32
    %52 = vector.broadcast %cst_22 : f32 to vector<12x128xf32>
    %53 = arith.maximumf %51, %52 : vector<12x128xf32>
    %54 = arith.truncf %53 : vector<12x128xf32> to vector<12x128xbf16>
    %cst_23 = arith.constant dense<0.000000e+00> : vector<12x128xf32>
    %55 = tpu.matmul %54, %7, %cst_23 {dimension_numbers = #tpu.dot_dimension_numbers<[1], [0], [0], [1], [0, 0, 1, 1], [], []>} : vector<12x128xbf16>, vector<128x128xbf16>, vector<12x128xf32> -> vector<12x128xf32>
    %56 = arith.addf %5, %55 : vector<12x128xf32>
    %c0_24 = arith.constant 0 : index
    %c0_25 = arith.constant 0 : index
    %57 = vector.load %arg4[%c0_24, %c0_25] : memref<128x128xbf16, #tpu.memory_space<vmem>>, vector<128x128xbf16>
    %c0_26 = arith.constant 0 : index
    %c0_27 = arith.constant 0 : index
    %58 = vector.load %arg5[%c0_26, %c0_27] : memref<128x128xbf16, #tpu.memory_space<vmem>>, vector<128x128xbf16>
    %cst_28 = arith.constant dense<0.000000e+00> : vector<128xf32>
    %59 = vector.multi_reduction <add>, %56, %cst_28 [0] : vector<12x128xf32> to vector<128xf32>
    %60 = vector.shape_cast %59 : vector<128xf32> to vector<1x128xf32>
    %61 = arith.mulf %56, %56 : vector<12x128xf32>
    %cst_29 = arith.constant dense<0.000000e+00> : vector<128xf32>
    %62 = vector.multi_reduction <add>, %61, %cst_29 [0] : vector<12x128xf32> to vector<128xf32>
    %63 = vector.shape_cast %62 : vector<128xf32> to vector<1x128xf32>
    %cst_30 = arith.constant 0.0833333358 : f32
    %64 = vector.broadcast %cst_30 : f32 to vector<1x128xf32>
    %65 = arith.mulf %60, %64 : vector<1x128xf32>
    %cst_31 = arith.constant 0.0833333358 : f32
    %66 = vector.broadcast %cst_31 : f32 to vector<1x128xf32>
    %67 = arith.mulf %63, %66 : vector<1x128xf32>
    %68 = arith.mulf %65, %65 : vector<1x128xf32>
    %69 = arith.subf %67, %68 : vector<1x128xf32>
    %cst_32 = arith.constant 0.000000e+00 : f32
    %70 = vector.broadcast %cst_32 : f32 to vector<1x128xf32>
    %71 = arith.maximumf %69, %70 : vector<1x128xf32>
    %72 = vector.broadcast %65 : vector<1x128xf32> to vector<12x128xf32>
    %73 = arith.subf %56, %72 : vector<12x128xf32>
    %cst_33 = arith.constant 9.99999974E-6 : f32
    %74 = vector.broadcast %cst_33 : f32 to vector<1x128xf32>
    %75 = arith.addf %71, %74 : vector<1x128xf32>
    %76 = math.rsqrt %75 : vector<1x128xf32>
    %77 = vector.broadcast %76 : vector<1x128xf32> to vector<12x128xf32>
    %78 = arith.mulf %73, %77 : vector<12x128xf32>
    %cst_34 = arith.constant 0.000000e+00 : f32
    %79 = vector.broadcast %cst_34 : f32 to vector<12x128xf32>
    %80 = arith.maximumf %78, %79 : vector<12x128xf32>
    %81 = arith.truncf %80 : vector<12x128xf32> to vector<12x128xbf16>
    %cst_35 = arith.constant dense<0.000000e+00> : vector<12x128xf32>
    %82 = tpu.matmul %81, %57, %cst_35 {dimension_numbers = #tpu.dot_dimension_numbers<[1], [0], [0], [1], [0, 0, 1, 1], [], []>} : vector<12x128xbf16>, vector<128x128xbf16>, vector<12x128xf32> -> vector<12x128xf32>
    %cst_36 = arith.constant dense<0.000000e+00> : vector<128xf32>
    %83 = vector.multi_reduction <add>, %82, %cst_36 [0] : vector<12x128xf32> to vector<128xf32>
    %84 = vector.shape_cast %83 : vector<128xf32> to vector<1x128xf32>
    %85 = arith.mulf %82, %82 : vector<12x128xf32>
    %cst_37 = arith.constant dense<0.000000e+00> : vector<128xf32>
    %86 = vector.multi_reduction <add>, %85, %cst_37 [0] : vector<12x128xf32> to vector<128xf32>
    %87 = vector.shape_cast %86 : vector<128xf32> to vector<1x128xf32>
    %cst_38 = arith.constant 0.0833333358 : f32
    %88 = vector.broadcast %cst_38 : f32 to vector<1x128xf32>
    %89 = arith.mulf %84, %88 : vector<1x128xf32>
    %cst_39 = arith.constant 0.0833333358 : f32
    %90 = vector.broadcast %cst_39 : f32 to vector<1x128xf32>
    %91 = arith.mulf %87, %90 : vector<1x128xf32>
    %92 = arith.mulf %89, %89 : vector<1x128xf32>
    %93 = arith.subf %91, %92 : vector<1x128xf32>
    %cst_40 = arith.constant 0.000000e+00 : f32
    %94 = vector.broadcast %cst_40 : f32 to vector<1x128xf32>
    %95 = arith.maximumf %93, %94 : vector<1x128xf32>
    %96 = vector.broadcast %89 : vector<1x128xf32> to vector<12x128xf32>
    %97 = arith.subf %82, %96 : vector<12x128xf32>
    %cst_41 = arith.constant 9.99999974E-6 : f32
    %98 = vector.broadcast %cst_41 : f32 to vector<1x128xf32>
    %99 = arith.addf %95, %98 : vector<1x128xf32>
    %100 = math.rsqrt %99 : vector<1x128xf32>
    %101 = vector.broadcast %100 : vector<1x128xf32> to vector<12x128xf32>
    %102 = arith.mulf %97, %101 : vector<12x128xf32>
    %cst_42 = arith.constant 0.000000e+00 : f32
    %103 = vector.broadcast %cst_42 : f32 to vector<12x128xf32>
    %104 = arith.maximumf %102, %103 : vector<12x128xf32>
    %105 = arith.truncf %104 : vector<12x128xf32> to vector<12x128xbf16>
    %cst_43 = arith.constant dense<0.000000e+00> : vector<12x128xf32>
    %106 = tpu.matmul %105, %58, %cst_43 {dimension_numbers = #tpu.dot_dimension_numbers<[1], [0], [0], [1], [0, 0, 1, 1], [], []>} : vector<12x128xbf16>, vector<128x128xbf16>, vector<12x128xf32> -> vector<12x128xf32>
    %107 = arith.addf %56, %106 : vector<12x128xf32>
    %cst_44 = arith.constant dense<0.000000e+00> : vector<128xf32>
    %108 = vector.multi_reduction <add>, %107, %cst_44 [0] : vector<12x128xf32> to vector<128xf32>
    %109 = vector.shape_cast %108 : vector<128xf32> to vector<1x128xf32>
    %110 = arith.mulf %107, %107 : vector<12x128xf32>
    %cst_45 = arith.constant dense<0.000000e+00> : vector<128xf32>
    %111 = vector.multi_reduction <add>, %110, %cst_45 [0] : vector<12x128xf32> to vector<128xf32>
    %112 = vector.shape_cast %111 : vector<128xf32> to vector<1x128xf32>
    %cst_46 = arith.constant 0.0833333358 : f32
    %113 = vector.broadcast %cst_46 : f32 to vector<1x128xf32>
    %114 = arith.mulf %109, %113 : vector<1x128xf32>
    %cst_47 = arith.constant 0.0833333358 : f32
    %115 = vector.broadcast %cst_47 : f32 to vector<1x128xf32>
    %116 = arith.mulf %112, %115 : vector<1x128xf32>
    %117 = arith.mulf %114, %114 : vector<1x128xf32>
    %118 = arith.subf %116, %117 : vector<1x128xf32>
    %cst_48 = arith.constant 0.000000e+00 : f32
    %119 = vector.broadcast %cst_48 : f32 to vector<1x128xf32>
    %120 = arith.maximumf %118, %119 : vector<1x128xf32>
    %121 = vector.broadcast %114 : vector<1x128xf32> to vector<12x128xf32>
    %122 = arith.subf %107, %121 : vector<12x128xf32>
    %cst_49 = arith.constant 9.99999974E-6 : f32
    %123 = vector.broadcast %cst_49 : f32 to vector<1x128xf32>
    %124 = arith.addf %120, %123 : vector<1x128xf32>
    %125 = math.rsqrt %124 : vector<1x128xf32>
    %126 = vector.broadcast %125 : vector<1x128xf32> to vector<12x128xf32>
    %127 = arith.mulf %122, %126 : vector<12x128xf32>
    %cst_50 = arith.constant 0.000000e+00 : f32
    %128 = vector.broadcast %cst_50 : f32 to vector<12x128xf32>
    %129 = arith.maximumf %127, %128 : vector<12x128xf32>
    %130 = arith.truncf %129 : vector<12x128xf32> to vector<12x128xbf16>
    %c0_51 = arith.constant 0 : index
    %c0_52 = arith.constant 0 : index
    %131 = vector.load %arg6[%c0_51, %c0_52] : memref<128x128xbf16, #tpu.memory_space<vmem>>, vector<128x128xbf16>
    %cst_53 = arith.constant dense<0.000000e+00> : vector<12x128xf32>
    %132 = tpu.matmul %130, %131, %cst_53 {dimension_numbers = #tpu.dot_dimension_numbers<[1], [0], [0], [1], [0, 0, 1, 1], [], []>} : vector<12x128xbf16>, vector<128x128xbf16>, vector<12x128xf32> -> vector<12x128xf32>
    %133 = tpu.iota {dimensions = array<i32: 1>} : vector<1x128xi32>
    %c9_i32 = arith.constant 9 : i32
    %134 = vector.broadcast %c9_i32 : i32 to vector<1x128xi32>
    %135 = arith.cmpi slt, %133, %134 : vector<1x128xi32>
    %cst_54 = arith.constant 0.000000e+00 : f32
    %cst_55 = arith.constant 1.000000e+30 : f32
    %136 = vector.broadcast %cst_54 : f32 to vector<1x128xf32>
    %137 = vector.broadcast %cst_55 : f32 to vector<1x128xf32>
    %138 = arith.select %135, %136, %137 : vector<1x128xi1>, vector<1x128xf32>
    %139 = vector.broadcast %138 : vector<1x128xf32> to vector<12x128xf32>
    %140 = arith.addf %132, %139 : vector<12x128xf32>
    %cst_56 = arith.constant dense<0x7F800000> : vector<12xf32>
    %141 = vector.multi_reduction <minimumf>, %140, %cst_56 [1] : vector<12x128xf32> to vector<12xf32>
    %142 = vector.shape_cast %141 : vector<12xf32> to vector<12x1xf32>
    %143 = vector.extract_strided_slice %132 {offsets = [0, 0], sizes = [12, 9], strides = [1, 1]} : vector<12x128xf32> to vector<12x9xf32>
    %144 = vector.broadcast %142 : vector<12x1xf32> to vector<12x9xf32>
    %145 = arith.subf %143, %144 : vector<12x9xf32>
    %c0_57 = arith.constant 0 : index
    %c0_58 = arith.constant 0 : index
    %146 = vector.load %arg7[%c0_57, %c0_58] : memref<12x9xf32, #tpu.memory_space<vmem>>, vector<12x9xf32>
    tpu.vector_store %arg7[%c0_57, %c0_58], %145 {strides = array<i32>} : memref<12x9xf32, #tpu.memory_space<vmem>>, vector<12x9xf32>,
    return
  }
}

</mosaic_0001>

<bundles_post_ra>
// kernel: tpu_custom_call.1
= control target key start
LH: loop header
LB: loop body
LE: loop exit
PB: predicated region body
PF: predicated region fallthrough
CT: control target
= control target key end

     0   :  { %12 = vsyncpa [#allocation3], 0  ;;  %s1529_s0 = inlined_call_operand.vmem [shape: f32[12,8], index: 0, kind: input, shape index: {}]   ;;  %s1530_s1 = inlined_call_operand.vmem [shape: bf16[8,128], index: 1, kind: input, shape index: {}]   ;;  %s1531_s2 = inlined_call_operand.hbm [shape: bf16[128,128], index: 2, kind: input, shape index: {}]   ;;  %s1532_s3 = inlined_call_operand.hbm [shape: bf16[128,128], index: 3, kind: input, shape index: {}]   ;;  %s1533_s4 = inlined_call_operand.hbm [shape: bf16[128,128], index: 4, kind: input, shape index: {}]   ;;  %s1534_s5 = inlined_call_operand.hbm [shape: bf16[128,128], index: 5, kind: input, shape index: {}]   ;;  %s1535_s6 = inlined_call_operand.hbm [shape: bf16[128,128], index: 6, kind: input, shape index: {}]   ;;  %s1536_s7 = inlined_call_operand.hbm [shape: f32[12,9], index: 7, kind: output, shape index: {}]  }
   0x1   :  { %13 = vsyncpa [#allocation6], 0 }
   0x2   :  { %14 = vsyncpa [#allocation9], 0 }
   0x3   :  { %15 = vsyncpa [#allocation4], 0  ;;  %s1273_s24 = smov [#allocation5]   ;;  %s1274_s26 = smov [#allocation8]  }
   0x4   :  { %s37_s25 = sshll.u32 %s1273_s24, 4  ;;  %s61_s27 = sshll.u32 %s1274_s26, 4  ;;  %s38_s25 = int_to_ptr.vmem [resolvable:$true] %s37_s25  ;;  %s1326_s27 = int_to_ptr.vmem [resolvable:$true] %s61_s27 }
   0x5   :  { %s1133_s30 = scalar_lea.hbm %s1532_s3, 1024 }
   0x6   :  { %p1134_p0 = scmp.ne.s32.totalorder %s1532_s3, %s1133_s30  ;;  %p1137_p1 = scmp.lt.u32.totalorder %s1133_s30, %s1532_s3 }
   0x8   :  { %p1139_p2 = pnand %p1137_p1, %p1134_p0 }
   0xa   :  { %1142 = shalt.err (!%p1139_p2)
}
   0xb   :  { %s1143_s12 = scalar_lea.vmem %s38_s25, 1024  ;;  %p1148_p4 = scmp.lt.s32.totalorder %s38_s25, %s38_s25 }
   0xc   :  { %p1144_p3 = scmp.ne.s32.totalorder %s38_s25, %s1143_s12  ;;  %p1149_p5 = scmp.lt.s32.totalorder %s1143_s12, %s1143_s12 }
   0xe   :  { %p1150_p6 = por %p1149_p5, %p1148_p4 }
  0x10   :  { %p1151_p7 = pnand %p1150_p6, %p1144_p3 }
  0x12   :  { %1154 = shalt.err (!%p1151_p7)
}
  0x13   :  { %s1275_s13 = smov 64   ;;  %s1276_s14 = smov 4  }
  0x14   :  { %43 = dma.hbm_to_vmem [thread:$0]  %s1532_s3, 1024, %s38_s25, [#allocation6], %s1275_s13, %s1275_s13, %s1276_s14  }
  0x15   :  { %s1155_s19 = scalar_lea.hbm %s1534_s5, 1024 }
  0x16   :  { %p1156_p8 = scmp.ne.s32.totalorder %s1534_s5, %s1155_s19  ;;  %p1159_p9 = scmp.lt.u32.totalorder %s1155_s19, %s1534_s5 }
  0x18   :  { %p1161_p10 = pnand %p1159_p9, %p1156_p8 }
  0x1a   :  { %1164 = shalt.err (!%p1161_p10)
}
  0x1b   :  { %s1165_s24 = scalar_lea.vmem %s1326_s27, 1024  ;;  %p1170_p12 = scmp.lt.s32.totalorder %s1326_s27, %s1326_s27 }
  0x1c   :  { %p1166_p11 = scmp.ne.s32.totalorder %s1326_s27, %s1165_s24  ;;  %p1171_p13 = scmp.lt.s32.totalorder %s1165_s24, %s1165_s24 }
  0x1e   :  { %p1172_p0 = por %p1171_p13, %p1170_p12 }
  0x20   :  { %p1173_p1 = pnand %p1172_p0, %p1166_p11 }
  0x22   :  { %1176 = shalt.err (!%p1173_p1)
}
  0x23   :  { %67 = dma.hbm_to_vmem [thread:$0]  %s1534_s5, 1024, %s1326_s27, [#allocation9], %s1275_s13, %s1275_s13, %s1276_s14  }
  0x24   :  { %s1277_s26 = smov [#allocation2]   ;;  %s1278_s29 = smov [#allocation7]  }
  0x25   :  { %s25_s28 = sshll.u32 %s1277_s26, 4  ;;  %s49_s30 = sshll.u32 %s1278_s29, 4  ;;  %s26_s28 = int_to_ptr.vmem [resolvable:$true] %s25_s28  ;;  %s1363_s30 = int_to_ptr.vmem [resolvable:$true] %s49_s30 }
  0x26   :  { %s1177_s10 = scalar_lea.hbm %s1531_s2, 1024 }
  0x27   :  { %p1178_p2 = scmp.ne.s32.totalorder %s1531_s2, %s1177_s10  ;;  %p1181_p3 = scmp.lt.u32.totalorder %s1177_s10, %s1531_s2 }
  0x29   :  { %p1183_p4 = pnand %p1181_p3, %p1178_p2 }
  0x2b   :  { %1186 = shalt.err (!%p1183_p4)
}
  0x2c   :  { %s1187_s5 = scalar_lea.vmem %s26_s28, 1024  ;;  %p1192_p6 = scmp.lt.s32.totalorder %s26_s28, %s26_s28 }
  0x2d   :  { %p1188_p5 = scmp.ne.s32.totalorder %s26_s28, %s1187_s5  ;;  %p1193_p7 = scmp.lt.s32.totalorder %s1187_s5, %s1187_s5 }
  0x2f   :  { %p1194_p8 = por %p1193_p7, %p1192_p6 }
  0x31   :  { %p1195_p9 = pnand %p1194_p8, %p1188_p5 }
  0x33   :  { %1198 = shalt.err (!%p1195_p9)
}
  0x34   :  { %31 = dma.hbm_to_vmem [thread:$0]  %s1531_s2, 1024, %s26_s28, [#allocation3], %s1275_s13, %s1275_s13, %s1276_s14  }
  0x35   :  { %s1199_s20 = scalar_lea.hbm %s1533_s4, 1024 }
  0x36   :  { %p1200_p10 = scmp.ne.s32.totalorder %s1533_s4, %s1199_s20  ;;  %p1203_p11 = scmp.lt.u32.totalorder %s1199_s20, %s1533_s4 }
  0x38   :  { %p1205_p12 = pnand %p1203_p11, %p1200_p10 }
  0x3a   :  { %1208 = shalt.err (!%p1205_p12)
}
  0x3b   :  { %s1209_s3 = scalar_lea.vmem %s1363_s30, 1024  ;;  %p1214_p0 = scmp.lt.s32.totalorder %s1363_s30, %s1363_s30 }
  0x3c   :  { %p1210_p13 = scmp.ne.s32.totalorder %s1363_s30, %s1209_s3  ;;  %p1215_p1 = scmp.lt.s32.totalorder %s1209_s3, %s1209_s3 }
  0x3e   :  { %p1216_p2 = por %p1215_p1, %p1214_p0 }
  0x40   :  { %p1217_p3 = pnand %p1216_p2, %p1210_p13 }
  0x42   :  { %1220 = shalt.err (!%p1217_p3)
}
  0x43   :  { %55 = dma.hbm_to_vmem [thread:$0]  %s1533_s4, 1024, %s1363_s30, [#allocation6], %s1275_s13, %s1275_s13, %s1276_s14  }
  0x44   :  { %s1279_s26 = smov [#allocation10]   ;;  %s1221_s9 = scalar_lea.hbm %s1535_s6, 1024 }
  0x45   :  { %s73_s28 = sshll.u32 %s1279_s26, 4  ;;  %p1222_p4 = scmp.ne.s32.totalorder %s1535_s6, %s1221_s9  ;;  %s74_s28 = int_to_ptr.vmem [resolvable:$true] %s73_s28 }
  0x46   :  { %p1225_p5 = scmp.lt.u32.totalorder %s1221_s9, %s1535_s6 }
  0x48   :  { %p1227_p6 = pnand %p1225_p5, %p1222_p4 }
  0x4a   :  { %1230 = shalt.err (!%p1227_p6)
}
  0x4b   :  { %s1231_s16 = scalar_lea.vmem %s74_s28, 1024  ;;  %p1236_p8 = scmp.lt.s32.totalorder %s74_s28, %s74_s28 }
  0x4c   :  { %p1232_p7 = scmp.ne.s32.totalorder %s74_s28, %s1231_s16  ;;  %p1237_p9 = scmp.lt.s32.totalorder %s1231_s16, %s1231_s16 }
  0x4e   :  { %p1238_p10 = por %p1237_p9, %p1236_p8 }
  0x50   :  { %p1239_p11 = pnand %p1238_p10, %p1232_p7 }
  0x52   :  { %1242 = shalt.err (!%p1239_p11)
}
  0x53   :  { %79 = dma.hbm_to_vmem [thread:$0]  %s1535_s6, 1024, %s74_s28, [#allocation9], %s1275_s13, %s1275_s13, %s1276_s14  }
  0x54   :  { %1265 = dma.done.wait [#allocation3], 1024  }
  0x55   :  { %1266 = vsyncadd [#allocation3], 4294966272 }
  0x56   :  { %1267 = dma.done.wait [#allocation6], 2048  }
  0x57   :  { %1268 = vsyncadd [#allocation6], 4294965248 }
  0x58   :  { %1269 = dma.done.wait [#allocation9], 2048  }
  0x59   :  { %1270 = vsyncadd [#allocation9], 4294965248  ;;  %v1280_v0 = vmov 0.0   ;;  %vm1281_vm0 = vmmov 0   ;;  %vm104_vm1 = vcmask 1043456   ;;  %v96_v2 = vld [vmem:[%s1529_s0] sm:$0xff] }
  0x5a   :  { %964 = vmatprep.subr.bf16.mxu0 %v1280_v0  ;;  %966 = vmatprep.mubr.msk.bf16.mxu0 %vm1281_vm0, %v1280_v0  ;;  %v99_v1 = vld [vmem:[%s1530_s1] sm:$0xf]  ;;  %v97_v3 = vld [vmem:[%s1529_s0 + $0x8] sm:$0xf]  ;;  %vm100_vm2 = vcmask 64512   ;;  %v1085_v8 = vld [vmem:[#allocation2 + $0x10] sm:$0xff]  }
  0x5b   :  { %970 = vmatprep.subr.bf16.mxu1 %v1280_v0  ;;  %986 = vmatprep.mubr.msk.bf16.mxu1 %vm1281_vm0, %v1280_v0  ;;  %v106_v4 = vsel %vm104_vm1, %v99_v1, 0  ;;  %v98_v5 = vpack.c.bf16 %v97_v3, %v96_v2  ;;  %v1083_v6 = vld [vmem:[#allocation2] sm:$0xff]   ;;  %v1084_v7 = vld [vmem:[#allocation2 + $0x8] sm:$0xff]   ;;  %v1086_v9 = vld [vmem:[#allocation2 + $0x18] sm:$0xff]   ;;  %vm853_vm4 = vcmask 72704   ;;  %s1283_s0 = smov [#allocation11]  }
  0x5c   :  { %965 = vmatpush3.bf16.msra.mxu0 %v106_v4  ;;  %971 = vmatpush3.bf16.msra.mxu1 %v1083_v6  ;;  %v1087_v10 = vld [vmem:[#allocation2 + $0x20] sm:$0xff]   ;;  %v1088_v11 = vld [vmem:[#allocation2 + $0x28] sm:$0xff]   ;;  %v1089_v12 = vld [vmem:[#allocation2 + $0x30] sm:$0xff]   ;;  %s862_s1 = sshll.u32 %s1283_s0, 4  ;;  %vm855_vm5 = vcmask 68608   ;;  %s863_s1 = int_to_ptr.vmem [resolvable:$true] %s862_s1 }
  0x5d   :  { %990 = vmatprep.subr.bf16.mxu0 %v1280_v0  ;;  %972 = vmatprep.subr.bf16.mxu1 %v1280_v0  ;;  %v1090_v13 = vld [vmem:[#allocation2 + $0x38] sm:$0xff]   ;;  %v1091_v52 = vld [vmem:[#allocation5] sm:$0xff]   ;;  %v1092_v53 = vld [vmem:[#allocation5 + $0x8] sm:$0xff]   ;;  %s1243_s18 = scalar_lea.vmem %s863_s1, 256  ;;  %p1248_p13 = scmp.lt.s32.totalorder %s863_s1, %s863_s1 }
  0x5e   :  { %v1093_v54 = vld [vmem:[#allocation5 + $0x10] sm:$0xff]   ;;  %v1094_v55 = vld [vmem:[#allocation5 + $0x18] sm:$0xff]   ;;  %v1095_v56 = vld [vmem:[#allocation5 + $0x20] sm:$0xff]   ;;  %p1244_p12 = scmp.ne.s32.totalorder %s863_s1, %s1243_s18  ;;  %p1249_p0 = scmp.lt.s32.totalorder %s1243_s18, %s1243_s18 }
  0x5f   :  { %967 = vmatmul.mubr.msk.bf16.vlgmr.msra.gmra.mrb[0].mxu0 %vm100_vm2, %v98_v5  ;;  %v1096_v57 = vld [vmem:[#allocation5 + $0x28] sm:$0xff]   ;;  %v1097_v58 = vld [vmem:[#allocation5 + $0x30] sm:$0xff]   ;;  %v1098_v59 = vld [vmem:[#allocation5 + $0x38] sm:$0xff]  }
  0x60   :  { %1006 = vmatprep.mubr.msk.bf16.mxu0 %vm1281_vm0, %v1280_v0  ;;  %973 = vmatpush3.bf16.msra.mxu1 %v1084_v7  ;;  %p1250_p1 = por %p1249_p0, %p1248_p13 }
  0x61   :  { %974 = vmatprep.subr.bf16.mxu1 %v1280_v0  ;;  %991 = vmatpush3.bf16.msra.mxu0 %v1091_v52 }
  0x62   :  { %992 = vmatprep.subr.bf16.mxu0 %v1280_v0  ;;  %p1251_p2 = pnand %p1250_p1, %p1244_p12 }
  0x64   :  { %975 = vmatpush3.bf16.msra.mxu1 %v1085_v8 }
  0x65   :  { %976 = vmatprep.subr.bf16.mxu1 %v1280_v0  ;;  %993 = vmatpush3.bf16.msra.mxu0 %v1092_v53 }
  0x66   :  { %994 = vmatprep.subr.bf16.mxu0 %v1280_v0 }
  0x68   :  { %977 = vmatpush3.bf16.msra.mxu1 %v1086_v9 }
  0x69   :  { %978 = vmatprep.subr.bf16.mxu1 %v1280_v0  ;;  %995 = vmatpush3.bf16.msra.mxu0 %v1093_v54 }
  0x6a   :  { %996 = vmatprep.subr.bf16.mxu0 %v1280_v0 }
  0x6c   :  { %979 = vmatpush3.bf16.msra.mxu1 %v1087_v10 }
  0x6d   :  { %980 = vmatprep.subr.bf16.mxu1 %v1280_v0  ;;  %997 = vmatpush3.bf16.msra.mxu0 %v1094_v55 }
  0x6e   :  { %998 = vmatprep.subr.bf16.mxu0 %v1280_v0 }
  0x70   :  { %981 = vmatpush3.bf16.msra.mxu1 %v1088_v11 }
  0x71   :  { %982 = vmatprep.subr.bf16.mxu1 %v1280_v0  ;;  %999 = vmatpush3.bf16.msra.mxu0 %v1095_v56 }
  0x72   :  { %1000 = vmatprep.subr.bf16.mxu0 %v1280_v0 }
  0x74   :  { %983 = vmatpush3.bf16.msra.mxu1 %v1089_v12 }
  0x75   :  { %984 = vmatprep.subr.bf16.mxu1 %v1280_v0  ;;  %1001 = vmatpush3.bf16.msra.mxu0 %v1096_v57 }
  0x76   :  { %1002 = vmatprep.subr.bf16.mxu0 %v1280_v0 }
  0x78   :  { %985 = vmatpush3.bf16.msra.mxu1 %v1090_v13 }
  0x79   :  { %1010 = vmatprep.subr.bf16.mxu1 %v1280_v0  ;;  %1003 = vmatpush3.bf16.msra.mxu0 %v1097_v58 }
  0x7a   :  { %1004 = vmatprep.subr.bf16.mxu0 %v1280_v0 }
  0x7d   :  { %1005 = vmatpush3.bf16.msra.mxu0 %v1098_v59 }
  0x7e   :  { %1030 = vmatprep.subr.bf16.mxu0 %v1280_v0 }
 0x132   :  { %v142_v14 = vpop.f32.mrb[0].mxu0 }
 0x133   :  { %v968_v15 = vpop.f32.mrb[1].mxu0  ;;  %v1442_v16 = vmax.f32 %v142_v14, 0.0 }
 0x134   :  { %v145_v17 = vpop.f32.mrb[2].mxu0 }
 0x135   :  { %v1444_v18 = vmax.f32 %v145_v17, 0.0  ;;  %v969_v19 = vpop.f32.mrb[3].mxu0  ;;  %v191_v22 = vmul.f32 %v1442_v16, %v1442_v16 }
 0x137   :  { %v183_v20 = vsel %vm104_vm1, %v1444_v18, 0.0  ;;  %v192_v21 = vmul.f32 %v1444_v18, %v1444_v18 }
 0x138   :  { %v184_v23 = vadd.f32 %v183_v20, %v1442_v16 }
 0x139   :  { %v193_v24 = vsel %vm104_vm1, %v192_v21, 0.0 }
 0x13a   :  { %v185_v25 = vrot.slane %v184_v23, 4  ;;  %v194_v26 = vadd.f32 %v193_v24, %v191_v22 }
 0x13c   :  { %v186_v27 = vadd.f32 %v185_v25, %v184_v23  ;;  %v195_v28 = vrot.slane %v194_v26, 4 }
 0x13e   :  { %v187_v29 = vrot.slane %v186_v27, 2  ;;  %v196_v30 = vadd.f32 %v195_v28, %v194_v26 }
 0x140   :  { %v188_v31 = vadd.f32 %v187_v29, %v186_v27  ;;  %v197_v32 = vrot.slane %v196_v30, 2 }
 0x142   :  { %v198_v33 = vadd.f32 %v197_v32, %v196_v30  ;;  %v189_v34 = vrot.slane %v188_v31, 1 }
 0x144   :  { %v199_v35 = vrot.slane %v198_v33, 1  ;;  %v190_v36 = vadd.f32 %v189_v34, %v188_v31 }
 0x146   :  { %v200_v37 = vadd.f32 %v199_v35, %v198_v33  ;;  %v201_v38 = vmul.f32 0.083333336, %v190_v36  ;;  %v1099_v35 = vld [vmem:[#allocation7] sm:$0xff]   ;;  %v1100_v36 = vld [vmem:[#allocation7 + $0x8] sm:$0xff]  }
 0x148   :  { %v202_v39 = vmul.f32 0.083333336, %v200_v37  ;;  %v203_v40 = vmul.f32 %v201_v38, %v201_v38  ;;  %v206_v44 = vsub.f32 %v1442_v16, %v201_v38  ;;  %v207_v45 = vsub.f32 %v1444_v18, %v201_v38  ;;  %v1101_v37 = vld [vmem:[#allocation7 + $0x10] sm:$0xff]   ;;  %v1102_v38 = vld [vmem:[#allocation7 + $0x18] sm:$0xff]  }
 0x14a   :  { %v204_v41 = vsub.f32 %v202_v39, %v203_v40  ;;  %v1103_v39 = vld [vmem:[#allocation7 + $0x20] sm:$0xff]   ;;  %v1104_v40 = vld [vmem:[#allocation7 + $0x28] sm:$0xff]  }
 0x14c   :  { %v205_v42 = vmax.f32 %v204_v41, 0.0  ;;  %v1105_v41 = vld [vmem:[#allocation7 + $0x30] sm:$0xff]  }
 0x14e   :  { %v208_v43 = vadd.f32 1e-05, %v205_v42  ;;  %v1106_v42 = vld [vmem:[#allocation7 + $0x38] sm:$0xff]  }
 0x150   :  { %1123 = vrsqrt.f32 %v208_v43 }
 0x15a   :  { %v1124_v46 = vpop.eup %1123 }
 0x15b   :  { %v210_v47 = vmul.f32 %v1124_v46, %v206_v44  ;;  %v211_v48 = vmul.f32 %v1124_v46, %v207_v45 }
 0x15d   :  { %v212_v49 = vmax.f32 %v210_v47, 0.0  ;;  %v213_v50 = vmax.f32 %v211_v48, 0.0 }
 0x15f   :  { %v214_v51 = vpack.c.bf16 %v213_v50, %v212_v49 }
 0x161   :  { %987 = vmatmul.mubr.bf16.vlgmr.msra.gmra.mrb[0].mxu1 %v214_v51 }
 0x162   :  { %1026 = vmatprep.mubr.msk.bf16.mxu1 %vm1281_vm0, %v1280_v0  ;;  %1011 = vmatpush3.bf16.msra.mxu1 %v1099_v35 }
 0x163   :  { %1012 = vmatprep.subr.bf16.mxu1 %v1280_v0 }
 0x166   :  { %1013 = vmatpush3.bf16.msra.mxu1 %v1100_v36 }
 0x167   :  { %1014 = vmatprep.subr.bf16.mxu1 %v1280_v0 }
 0x16a   :  { %1015 = vmatpush3.bf16.msra.mxu1 %v1101_v37 }
 0x16b   :  { %1016 = vmatprep.subr.bf16.mxu1 %v1280_v0 }
 0x16e   :  { %1017 = vmatpush3.bf16.msra.mxu1 %v1102_v38 }
 0x16f   :  { %1018 = vmatprep.subr.bf16.mxu1 %v1280_v0 }
 0x172   :  { %1019 = vmatpush3.bf16.msra.mxu1 %v1103_v39 }
 0x173   :  { %1020 = vmatprep.subr.bf16.mxu1 %v1280_v0 }
 0x176   :  { %1021 = vmatpush3.bf16.msra.mxu1 %v1104_v40 }
 0x177   :  { %1022 = vmatprep.subr.bf16.mxu1 %v1280_v0 }
 0x17a   :  { %1023 = vmatpush3.bf16.msra.mxu1 %v1105_v41 }
 0x17b   :  { %1024 = vmatprep.subr.bf16.mxu1 %v1280_v0 }
 0x17e   :  { %1025 = vmatpush3.bf16.msra.mxu1 %v1106_v42 }
 0x17f   :  { %1050 = vmatprep.subr.bf16.mxu1 %v1280_v0 }
 0x234   :  { %v297_v60 = vpop.f32.mrb[0].mxu1 }
 0x235   :  { %v988_v61 = vpop.f32.mrb[1].mxu1  ;;  %v312_v3 = vmul.f32 %v297_v60, %v297_v60 }
 0x236   :  { %v300_v62 = vpop.f32.mrb[2].mxu1 }
 0x237   :  { %v304_v63 = vsel %vm104_vm1, %v300_v62, 0.0  ;;  %v313_v1 = vmul.f32 %v300_v62, %v300_v62  ;;  %v989_v2 = vpop.f32.mrb[3].mxu1 }
 0x238   :  { %v305_v4 = vadd.f32 %v304_v63, %v297_v60 }
 0x239   :  { %v314_v5 = vsel %vm104_vm1, %v313_v1, 0.0 }
 0x23a   :  { %v306_v6 = vrot.slane %v305_v4, 4  ;;  %v315_v7 = vadd.f32 %v314_v5, %v312_v3 }
 0x23c   :  { %v307_v8 = vadd.f32 %v306_v6, %v305_v4  ;;  %v316_v9 = vrot.slane %v315_v7, 4 }
 0x23e   :  { %v308_v10 = vrot.slane %v307_v8, 2  ;;  %v317_v11 = vadd.f32 %v316_v9, %v315_v7 }
 0x240   :  { %v309_v12 = vadd.f32 %v308_v10, %v307_v8  ;;  %v318_v13 = vrot.slane %v317_v11, 2 }
 0x242   :  { %v310_v14 = vrot.slane %v309_v12, 1  ;;  %v319_v15 = vadd.f32 %v318_v13, %v317_v11 }
 0x244   :  { %v311_v17 = vadd.f32 %v310_v14, %v309_v12  ;;  %v320_v19 = vrot.slane %v319_v15, 1 }
 0x246   :  { %v321_v20 = vadd.f32 %v320_v19, %v319_v15  ;;  %v322_v21 = vmul.f32 0.083333336, %v311_v17  ;;  %v1107_v17 = vld [vmem:[#allocation8] sm:$0xff]   ;;  %v1108_v19 = vld [vmem:[#allocation8 + $0x8] sm:$0xff]  }
 0x248   :  { %v323_v22 = vmul.f32 0.083333336, %v321_v20  ;;  %v324_v23 = vmul.f32 %v322_v21, %v322_v21  ;;  %v328_v24 = vsub.f32 %v300_v62, %v322_v21  ;;  %v327_v25 = vsub.f32 %v297_v60, %v322_v21  ;;  %v1109_v20 = vld [vmem:[#allocation8 + $0x10] sm:$0xff]   ;;  %v1110_v21 = vld [vmem:[#allocation8 + $0x18] sm:$0xff]  }
 0x24a   :  { %v325_v26 = vsub.f32 %v323_v22, %v324_v23  ;;  %v1111_v22 = vld [vmem:[#allocation8 + $0x20] sm:$0xff]   ;;  %v1112_v23 = vld [vmem:[#allocation8 + $0x28] sm:$0xff]  }
 0x24c   :  { %v326_v27 = vmax.f32 %v325_v26, 0.0 }
 0x24e   :  { %v329_v28 = vadd.f32 1e-05, %v326_v27 }
 0x250   :  { %1125 = vrsqrt.f32 %v329_v28 }
 0x25a   :  { %v1126_v29 = vpop.eup %1125 }
 0x25b   :  { %v332_v30 = vmul.f32 %v1126_v29, %v328_v24  ;;  %v331_v31 = vmul.f32 %v1126_v29, %v327_v25  ;;  %v1113_v24 = vld [vmem:[#allocation8 + $0x30] sm:$0xff]   ;;  %v1114_v25 = vld [vmem:[#allocation8 + $0x38] sm:$0xff]  }
 0x25d   :  { %v334_v32 = vmax.f32 %v332_v30, 0.0  ;;  %v333_v33 = vmax.f32 %v331_v31, 0.0 }
 0x25f   :  { %v335_v34 = vpack.c.bf16 %v334_v32, %v333_v33 }
 0x261   :  { %1007 = vmatmul.mubr.bf16.vlgmr.msra.gmra.mrb[4].mxu0 %v335_v34 }
 0x262   :  { %1046 = vmatprep.mubr.msk.bf16.mxu0 %vm1281_vm0, %v1280_v0  ;;  %1031 = vmatpush3.bf16.msra.mxu0 %v1107_v17 }
 0x263   :  { %1032 = vmatprep.subr.bf16.mxu0 %v1280_v0 }
 0x266   :  { %1033 = vmatpush3.bf16.msra.mxu0 %v1108_v19 }
 0x267   :  { %1034 = vmatprep.subr.bf16.mxu0 %v1280_v0 }
 0x26a   :  { %1035 = vmatpush3.bf16.msra.mxu0 %v1109_v20 }
 0x26b   :  { %1036 = vmatprep.subr.bf16.mxu0 %v1280_v0 }
 0x26e   :  { %1037 = vmatpush3.bf16.msra.mxu0 %v1110_v21 }
 0x26f   :  { %1038 = vmatprep.subr.bf16.mxu0 %v1280_v0 }
 0x272   :  { %1039 = vmatpush3.bf16.msra.mxu0 %v1111_v22 }
 0x273   :  { %1040 = vmatprep.subr.bf16.mxu0 %v1280_v0 }
 0x276   :  { %1041 = vmatpush3.bf16.msra.mxu0 %v1112_v23 }
 0x277   :  { %1042 = vmatprep.subr.bf16.mxu0 %v1280_v0 }
 0x27a   :  { %1043 = vmatpush3.bf16.msra.mxu0 %v1113_v24 }
 0x27b   :  { %1044 = vmatprep.subr.bf16.mxu0 %v1280_v0 }
 0x27e   :  { %1045 = vmatpush3.bf16.msra.mxu0 %v1114_v25 }
 0x334   :  { %v418_v43 = vpop.f32.mrb[4].mxu0 }
 0x335   :  { %v1008_v44 = vpop.f32.mrb[5].mxu0  ;;  %v1479_v45 = vadd.f32 %v418_v43, %v1442_v16 }
 0x336   :  { %v421_v46 = vpop.f32.mrb[6].mxu0 }
 0x337   :  { %v1482_v47 = vadd.f32 %v421_v46, %v1444_v18  ;;  %v1009_v48 = vpop.f32.mrb[7].mxu0  ;;  %v467_v51 = vmul.f32 %v1479_v45, %v1479_v45 }
 0x339   :  { %v459_v49 = vsel %vm104_vm1, %v1482_v47, 0.0  ;;  %v468_v50 = vmul.f32 %v1482_v47, %v1482_v47 }
 0x33a   :  { %v460_v52 = vadd.f32 %v459_v49, %v1479_v45 }
 0x33b   :  { %v469_v53 = vsel %vm104_vm1, %v468_v50, 0.0 }
 0x33c   :  { %v461_v16 = vrot.slane %v460_v52, 4  ;;  %v470_v54 = vadd.f32 %v469_v53, %v467_v51 }
 0x33e   :  { %v462_v55 = vadd.f32 %v461_v16, %v460_v52  ;;  %v471_v56 = vrot.slane %v470_v54, 4 }
 0x340   :  { %v463_v18 = vrot.slane %v462_v55, 2  ;;  %v472_v57 = vadd.f32 %v471_v56, %v470_v54 }
 0x342   :  { %v464_v58 = vadd.f32 %v463_v18, %v462_v55  ;;  %v473_v59 = vrot.slane %v472_v57, 2 }
 0x344   :  { %v465_v60 = vrot.slane %v464_v58, 1  ;;  %v474_v61 = vadd.f32 %v473_v59, %v472_v57 }
 0x346   :  { %v466_v62 = vadd.f32 %v465_v60, %v464_v58  ;;  %v475_v63 = vrot.slane %v474_v61, 1 }
 0x348   :  { %v476_v1 = vadd.f32 %v475_v63, %v474_v61  ;;  %v477_v2 = vmul.f32 0.083333336, %v466_v62  ;;  %v1115_v62 = vld [vmem:[#allocation10] sm:$0xff]   ;;  %v1116_v63 = vld [vmem:[#allocation10 + $0x8] sm:$0xff]  }
 0x34a   :  { %v478_v3 = vmul.f32 0.083333336, %v476_v1  ;;  %v479_v4 = vmul.f32 %v477_v2, %v477_v2  ;;  %v483_v8 = vsub.f32 %v1482_v47, %v477_v2  ;;  %v482_v9 = vsub.f32 %v1479_v45, %v477_v2  ;;  %v1117_v1 = vld [vmem:[#allocation10 + $0x10] sm:$0xff]   ;;  %v1118_v2 = vld [vmem:[#allocation10 + $0x18] sm:$0xff]  }
 0x34c   :  { %v480_v5 = vsub.f32 %v478_v3, %v479_v4  ;;  %v1119_v3 = vld [vmem:[#allocation10 + $0x20] sm:$0xff]   ;;  %v1120_v4 = vld [vmem:[#allocation10 + $0x28] sm:$0xff]  }
 0x34e   :  { %v481_v6 = vmax.f32 %v480_v5, 0.0  ;;  %v1121_v5 = vld [vmem:[#allocation10 + $0x30] sm:$0xff]  }
 0x350   :  { %v484_v7 = vadd.f32 1e-05, %v481_v6  ;;  %v1122_v6 = vld [vmem:[#allocation10 + $0x38] sm:$0xff]  }
 0x352   :  { %1127 = vrsqrt.f32 %v484_v7 }
 0x35c   :  { %v1128_v10 = vpop.eup %1127 }
 0x35d   :  { %v486_v11 = vmul.f32 %v1128_v10, %v482_v9  ;;  %v487_v12 = vmul.f32 %v1128_v10, %v483_v8 }
 0x35f   :  { %v488_v13 = vmax.f32 %v486_v11, 0.0  ;;  %v489_v14 = vmax.f32 %v487_v12, 0.0 }
 0x361   :  { %v490_v15 = vpack.c.bf16 %v489_v14, %v488_v13 }
 0x363   :  { %1027 = vmatmul.mubr.bf16.vlgmr.msra.gmra.mrb[4].mxu1 %v490_v15 }
 0x364   :  { %1066 = vmatprep.mubr.msk.bf16.mxu1 %vm1281_vm0, %v1280_v0  ;;  %1051 = vmatpush3.bf16.msra.mxu1 %v1115_v62 }
 0x365   :  { %1052 = vmatprep.subr.bf16.mxu1 %v1280_v0 }
 0x368   :  { %1053 = vmatpush3.bf16.msra.mxu1 %v1116_v63 }
 0x369   :  { %1054 = vmatprep.subr.bf16.mxu1 %v1280_v0 }
 0x36c   :  { %1055 = vmatpush3.bf16.msra.mxu1 %v1117_v1 }
 0x36d   :  { %1056 = vmatprep.subr.bf16.mxu1 %v1280_v0 }
 0x370   :  { %1057 = vmatpush3.bf16.msra.mxu1 %v1118_v2 }
 0x371   :  { %1058 = vmatprep.subr.bf16.mxu1 %v1280_v0 }
 0x374   :  { %1059 = vmatpush3.bf16.msra.mxu1 %v1119_v3 }
 0x375   :  { %1060 = vmatprep.subr.bf16.mxu1 %v1280_v0 }
 0x378   :  { %1061 = vmatpush3.bf16.msra.mxu1 %v1120_v4 }
 0x379   :  { %1062 = vmatprep.subr.bf16.mxu1 %v1280_v0 }
 0x37c   :  { %1063 = vmatpush3.bf16.msra.mxu1 %v1121_v5 }
 0x37d   :  { %1064 = vmatprep.subr.bf16.mxu1 %v1280_v0 }
 0x380   :  { %1065 = vmatpush3.bf16.msra.mxu1 %v1122_v6 }
 0x436   :  { %v573_v26 = vpop.f32.mrb[4].mxu1 }
 0x437   :  { %v1028_v27 = vpop.f32.mrb[5].mxu1  ;;  %v588_v32 = vmul.f32 %v573_v26, %v573_v26 }
 0x438   :  { %v576_v28 = vpop.f32.mrb[6].mxu1 }
 0x439   :  { %v580_v29 = vsel %vm104_vm1, %v576_v28, 0.0  ;;  %v589_v30 = vmul.f32 %v576_v28, %v576_v28  ;;  %v1029_v31 = vpop.f32.mrb[7].mxu1 }
 0x43a   :  { %v581_v33 = vadd.f32 %v580_v29, %v573_v26 }
 0x43b   :  { %v590_v34 = vsel %vm104_vm1, %v589_v30, 0.0 }
 0x43c   :  { %v582_v35 = vrot.slane %v581_v33, 4  ;;  %v591_v36 = vadd.f32 %v590_v34, %v588_v32 }
 0x43e   :  { %v583_v37 = vadd.f32 %v582_v35, %v581_v33  ;;  %v592_v38 = vrot.slane %v591_v36, 4 }
 0x440   :  { %v584_v39 = vrot.slane %v583_v37, 2  ;;  %v593_v40 = vadd.f32 %v592_v38, %v591_v36 }
 0x442   :  { %v585_v41 = vadd.f32 %v584_v39, %v583_v37  ;;  %v594_v42 = vrot.slane %v593_v40, 2 }
 0x444   :  { %v586_v43 = vrot.slane %v585_v41, 1  ;;  %v595_v44 = vadd.f32 %v594_v42, %v593_v40 }
 0x446   :  { %v587_v46 = vadd.f32 %v586_v43, %v585_v41  ;;  %v596_v48 = vrot.slane %v595_v44, 1 }
 0x448   :  { %v597_v49 = vadd.f32 %v596_v48, %v595_v44  ;;  %v598_v50 = vmul.f32 0.083333336, %v587_v46  ;;  %v840_v44 = vlaneseq  ;;  %v1282_v48 = vmov 1e+30  }
 0x44a   :  { %v599_v51 = vmul.f32 0.083333336, %v597_v49  ;;  %v600_v52 = vmul.f32 %v598_v50, %v598_v50  ;;  %v604_v53 = vsub.f32 %v576_v28, %v598_v50  ;;  %v603_v16 = vsub.f32 %v573_v26, %v598_v50 }
 0x44b   :  { %v841_v46 = vand.u32 127, %v840_v44 }
 0x44c   :  { %v601_v54 = vsub.f32 %v599_v51, %v600_v52 }
 0x44d   :  { %vm842_vm3 = vcmp.lt.s32.totalorder %v841_v46, 9 }
 0x44e   :  { %v602_v55 = vmax.f32 %v601_v54, 0.0  ;;  %v843_v49 = vsel %vm842_vm3, 0.0, %v1282_v48 }
 0x450   :  { %v605_v56 = vadd.f32 1e-05, %v602_v55 }
 0x452   :  { %1129 = vrsqrt.f32 %v605_v56 }
 0x45c   :  { %v1130_v18 = vpop.eup %1129 }
 0x45d   :  { %v608_v57 = vmul.f32 %v1130_v18, %v604_v53  ;;  %v607_v58 = vmul.f32 %v1130_v18, %v603_v16 }
 0x45f   :  { %v610_v59 = vmax.f32 %v608_v57, 0.0  ;;  %v609_v60 = vmax.f32 %v607_v58, 0.0 }
 0x461   :  { %v611_v61 = vpack.c.bf16 %v610_v59, %v609_v60 }
 0x463   :  { %1047 = vmatmul.mubr.bf16.vlgmr.msra.gmra.mrb[8].mxu0 %v611_v61 }
 0x536   :  { %v694_v7 = vpop.f32.mrb[8].mxu0 }
 0x537   :  { %v1048_v8 = vpop.f32.mrb[9].mxu0  ;;  %v701_v9 = vadd.f32 %v694_v7, %v1479_v45 }
 0x538   :  { %v697_v10 = vpop.f32.mrb[10].mxu0 }
 0x539   :  { %v702_v11 = vadd.f32 %v697_v10, %v1482_v47  ;;  %v1049_v12 = vpop.f32.mrb[11].mxu0  ;;  %v711_v15 = vmul.f32 %v701_v9, %v701_v9 }
 0x53b   :  { %v703_v13 = vsel %vm104_vm1, %v702_v11, 0.0  ;;  %v712_v14 = vmul.f32 %v702_v11, %v702_v11 }
 0x53c   :  { %v704_v17 = vadd.f32 %v703_v13, %v701_v9 }
 0x53d   :  { %v713_v19 = vsel %vm104_vm1, %v712_v14, 0.0 }
 0x53e   :  { %v705_v20 = vrot.slane %v704_v17, 4  ;;  %v714_v21 = vadd.f32 %v713_v19, %v711_v15 }
 0x540   :  { %v706_v0 = vadd.f32 %v705_v20, %v704_v17  ;;  %v715_v22 = vrot.slane %v714_v21, 4 }
 0x542   :  { %v707_v23 = vrot.slane %v706_v0, 2  ;;  %v716_v24 = vadd.f32 %v715_v22, %v714_v21 }
 0x544   :  { %v708_v25 = vadd.f32 %v707_v23, %v706_v0  ;;  %v717_v26 = vrot.slane %v716_v24, 2 }
 0x546   :  { %v709_v45 = vrot.slane %v708_v25, 1  ;;  %v718_v27 = vadd.f32 %v717_v26, %v716_v24 }
 0x548   :  { %v710_v28 = vadd.f32 %v709_v45, %v708_v25  ;;  %v719_v47 = vrot.slane %v718_v27, 1 }
 0x54a   :  { %v720_v29 = vadd.f32 %v719_v47, %v718_v27  ;;  %v721_v30 = vmul.f32 0.083333336, %v710_v28 }
 0x54c   :  { %v722_v31 = vmul.f32 0.083333336, %v720_v29  ;;  %v723_v32 = vmul.f32 %v721_v30, %v721_v30  ;;  %v727_v33 = vsub.f32 %v702_v11, %v721_v30  ;;  %v726_v34 = vsub.f32 %v701_v9, %v721_v30 }
 0x54e   :  { %v724_v35 = vsub.f32 %v722_v31, %v723_v32 }
 0x550   :  { %v725_v36 = vmax.f32 %v724_v35, 0.0 }
 0x552   :  { %v728_v37 = vadd.f32 1e-05, %v725_v36 }
 0x554   :  { %1131 = vrsqrt.f32 %v728_v37 }
 0x55e   :  { %v1132_v38 = vpop.eup %1131 }
 0x55f   :  { %v731_v39 = vmul.f32 %v1132_v38, %v727_v33  ;;  %v730_v40 = vmul.f32 %v1132_v38, %v726_v34 }
 0x561   :  { %v733_v41 = vmax.f32 %v731_v39, 0.0  ;;  %v732_v42 = vmax.f32 %v730_v40, 0.0 }
 0x563   :  { %v734_v43 = vpack.c.bf16 %v733_v41, %v732_v42 }
 0x565   :  { %1067 = vmatmul.mubr.bf16.vlgmr.msra.gmra.mrb[8].mxu1 %v734_v43 }
 0x638   :  { %v833_v50 = vpop.f32.mrb[8].mxu1 }
 0x639   :  { %v1068_v51 = vpop.f32.mrb[9].mxu1  ;;  %v844_v52 = vadd.f32 %v843_v49, %v833_v50 }
 0x63a   :  { %v836_v53 = vpop.f32.mrb[10].mxu1 }
 0x63b   :  { %846 = vmin.xlane.f32.xlu0 %v844_v52  ;;  %v845_v16 = vadd.f32 %v843_v49, %v836_v53  ;;  %v1069_v54 = vpop.f32.mrb[11].mxu1 }
 0x63d   :  { %v848_v55 = vsel %vm104_vm1, %v845_v16, inf }
 0x63f   :  { %849 = vmin.xlane.f32.xlu0 %v848_v55 }
 0x6c8   :  { %v847_v56 = vpop.xlane.xlu0 %846 }
 0x6c9   :  { %v851_v18 = vsub.f32 %v833_v50, %v847_v56 }
 0x6cb   :  { %854 = vst.msk [vmem:[#allocation11] sm:$0xff] %vm853_vm4, %v851_v18 }
 0x6cc   :  { %v850_v57 = vpop.xlane.xlu0 %849 }
 0x6cd   :  { %v852_v58 = vsub.f32 %v836_v53, %v850_v57 }
 0x6cf   :  { %856 = vst.msk [vmem:[#allocation11 + $0x8] sm:$0xf] %vm855_vm5, %v852_v58 }
 0x6d0   :  { %1254 = shalt.err (!%p1251_p2)
}
 0x6d1   :  { %s1255_s21 = scalar_lea.hbm %s1536_s7, 256 }
 0x6d2   :  { %p1256_p3 = scmp.ne.s32.totalorder %s1536_s7, %s1255_s21  ;;  %p1259_p4 = scmp.lt.u32.totalorder %s1255_s21, %s1536_s7 }
 0x6d4   :  { %p1261_p5 = pnand %p1259_p4, %p1256_p3 }
 0x6d6   :  { %1264 = shalt.err (!%p1261_p5)
}
 0x6d7   :  { %s1284_s2 = smov 128   ;;  %s1285_s25 = smov 8  }
 0x6d8   :  { %868 = dma.vmem_to_hbm [thread:$0]  %s863_s1, 256, %s1536_s7, [#allocation4], %s1284_s2, %s1284_s2, %s1285_s25  }
 0x6d9   :  { %1271 = dma.done.wait [#allocation4], 256  }
 0x6da   :  { %1272 = vsyncadd [#allocation4], 4294967040 }
 0x6db   :  { %872 = vsyncpa [#allocation3], 1 }
 0x6dc   :  { %873 = vsyncpa [#allocation6], 1 }
 0x6dd   :  { %874 = vsyncpa [#allocation9], 1 }
 0x6de   :  { %875 = vsyncpa [#allocation4], 1 }

</bundles_post_ra>
